<compile_context>
chip_gen: v5e
topology: v5e:2x2
jax: 0.10.0
libtpu: 0.0.40
codegen_flags: <defaults>
</compile_context>

<pallas_src>
import functools

import jax
import jax.numpy as jnp
from jax.experimental import pallas as pl
from jax.experimental.pallas import tpu as pltpu


def _linear_mafl_kernel(x_ref, w_ref, b_ref, o_ref):
    # x_ref: (tb, in_f)    streamed batch tile (batch on sublanes, feats on lanes)
    # w_ref: (in_f, out_f) folded weight, VMEM-resident across the whole grid
    # b_ref: (1, out_f)    bias, broadcast over the batch rows
    # o_ref: (tb, out_f)   output tile in natural (batch, out) layout
    acc = jnp.dot(x_ref[...], w_ref[...], preferred_element_type=jnp.float32)
    o_ref[...] = (acc + b_ref[...]).astype(o_ref.dtype)


def _round_up(n, m):
    return ((n + m - 1) // m) * m


def fold_params(z_weight, w_weight, w_bias, dtype=None):
    """Exact fp32 fold of the two linears (no activation in between).

    Returns (w_eff, bias2d) with w_eff: (in_f, out_f), bias2d: (1, out_f).
    Hoist this out of the per-call path when the parameters are static.
    """
    w_eff = jnp.dot(w_weight, z_weight, preferred_element_type=jnp.float32).T
    if dtype is not None:
        w_eff = w_eff.astype(dtype)
    bias2d = w_bias.reshape(1, -1).astype(jnp.float32)
    return w_eff, bias2d


@functools.partial(jax.jit, static_argnames=("block_b",))
def linear_mafl_apply(x, w_eff, bias2d, *, block_b=16384):
    """y = x @ w_eff + bias, streamed over the batch.

    x:      (B, in_f)
    w_eff:  (in_f, out_f)   folded weight (see fold_params)
    bias2d: (1, out_f)
    returns (B, out_f)
    """
    B, in_f = x.shape
    out_f = w_eff.shape[1]

    # Batch tile: multiple of 8 (sublane tiling); as large as VMEM comfortably
    # allows -- this kernel is bandwidth/step-overhead bound so bigger is
    # better (>=8192 on v5e, >=16384 on v6e/v7x).  Clamped to the (8-aligned)
    # batch so a block never exceeds the array; no padding of x is performed,
    # the tail block uses masked partial loads/stores.
    tb = max(8, min(_round_up(block_b, 8), _round_up(B, 8)))
    grid = (pl.cdiv(B, tb),)

    return pl.pallas_call(
        _linear_mafl_kernel,
        out_shape=jax.ShapeDtypeStruct((B, out_f), x.dtype),
        grid_spec=pltpu.PrefetchScalarGridSpec(
            num_scalar_prefetch=0,
            grid=grid,
            in_specs=[
                pl.BlockSpec((tb, in_f), lambda i: (i, 0)),     # x: streamed per tile
                pl.BlockSpec((in_f, out_f), lambda i: (0, 0)),  # folded weight: resident
                pl.BlockSpec((1, out_f), lambda i: (0, 0)),     # bias: resident
            ],
            out_specs=pl.BlockSpec((tb, out_f), lambda i: (i, 0)),
        ),
        compiler_params=pltpu.CompilerParams(
            # Independent batch tiles -> usable by both TensorCores on v7x.
            dimension_semantics=("parallel",),
            # ~4 * tb * 512 B working set at the default tb=16384 (~32 MiB,
            # counting 4x lane padding of the 32-wide blocks); 48 MiB leaves
            # headroom and is within v7x's 64 MiB physical VMEM.
            vmem_limit_bytes=48 * 1024 * 1024,
        ),
    )(x, w_eff, bias2d)


def linear_mafl_forward(x, z_weight, w_weight, w_bias, *, block_b=16384):
    """LinearMAFL forward: (x @ Z.weight.T) @ W.weight.T + W.bias."""
    w_eff, bias2d = fold_params(z_weight, w_weight, w_bias, dtype=x.dtype)
    return linear_mafl_apply(x, w_eff, bias2d, block_b=block_b)


def reference_forward(x, z_weight, w_weight, w_bias):
    return (x @ z_weight.T) @ w_weight.T + w_bias


if __name__ == "__main__":
    # Shapes consistent with the module: in_features=32, middle=16, out=1.
    batch = 8
    in_features = 32
    middle_features = 16
    out_features = 1

    key = jax.random.PRNGKey(0)
    kx, kz, kw, kb = jax.random.split(key, 4)

    x = jax.random.normal(kx, (batch, in_features), dtype=jnp.float32)
    z_weight = jax.random.normal(kz, (middle_features, in_features), dtype=jnp.float32) * 0.1
    w_weight = jax.random.normal(kw, (out_features, middle_features), dtype=jnp.float32) * 0.1
    w_bias = jax.random.normal(kb, (out_features,), dtype=jnp.float32) * 0.1

    out = jax.block_until_ready(linear_mafl_forward(x, z_weight, w_weight, w_bias))
    ref = reference_forward(x, z_weight, w_weight, w_bias)
    assert out.shape == (batch, out_features)
    assert jnp.allclose(out, ref, atol=5e-5, rtol=5e-5), "mismatch vs reference (small batch)"

    # Ragged batch: exercises the pad-free tail (masked partial block) and a
    # multi-step grid: tb=256 -> grid=(4,), last block covers rows 768..999.
    x2 = jax.random.normal(jax.random.PRNGKey(1), (1000, in_features), dtype=jnp.float32)
    out2 = jax.block_until_ready(
        linear_mafl_forward(x2, z_weight, w_weight, w_bias, block_b=256))
    ref2 = reference_forward(x2, z_weight, w_weight, w_bias)
    assert out2.shape == (1000, out_features)
    assert jnp.allclose(out2, ref2, atol=5e-5, rtol=5e-5), "mismatch vs reference (tiled batch)"

    print("KERNEL_OK")
</pallas_src>

<mosaic_0001>
module attributes {stable_mosaic.version = 11 : i64} {
  func.func @_linear_mafl_kernel(%arg0: i32, %arg1: memref<8x32xf32, #tpu.memory_space<vmem>>, %arg2: memref<32x1xf32, #tpu.memory_space<vmem>>, %arg3: memref<1x1xf32, #tpu.memory_space<vmem>>, %arg4: memref<8x1xf32, #tpu.memory_space<vmem>>) attributes {dimension_semantics = [#tpu.dimension_semantics<parallel>], iteration_bounds = array<i64: 1>, scalar_prefetch = 0 : i64, scratch_operands = 0 : i64, tpu.core_type = #tpu.core_type<tc>, window_params = [{transform_indices = @transform_0, window_bounds = array<i64: 8, 32>}, {pipeline_mode = #tpu.pipeline_mode<synchronous>, transform_indices = @transform_1, window_bounds = array<i64: 32, 1>}, {pipeline_mode = #tpu.pipeline_mode<synchronous>, transform_indices = @transform_2, window_bounds = array<i64: 1, 1>}, {transform_indices = @transform_3, window_bounds = array<i64: 8, 1>}]} {
    %c0 = arith.constant 0 : index
    %c0_0 = arith.constant 0 : index
    %0 = vector.load %arg1[%c0, %c0_0] : memref<8x32xf32, #tpu.memory_space<vmem>>, vector<8x32xf32>
    %c0_1 = arith.constant 0 : index
    %c0_2 = arith.constant 0 : index
    %1 = vector.load %arg2[%c0_1, %c0_2] : memref<32x1xf32, #tpu.memory_space<vmem>>, vector<32x1xf32>
    %cst = arith.constant dense<0.000000e+00> : vector<8x1xf32>
    %2 = tpu.matmul %0, %1, %cst {dimension_numbers = #tpu.dot_dimension_numbers<[1], [0], [0], [1], [0, 0, 1, 1], [], []>} : vector<8x32xf32>, vector<32x1xf32>, vector<8x1xf32> -> vector<8x1xf32>
    %c0_3 = arith.constant 0 : index
    %c0_4 = arith.constant 0 : index
    %3 = vector.load %arg3[%c0_3, %c0_4] : memref<1x1xf32, #tpu.memory_space<vmem>>, vector<1x1xf32>
    %4 = vector.broadcast %3 : vector<1x1xf32> to vector<8x1xf32>
    %5 = arith.addf %2, %4 : vector<8x1xf32>
    %c0_5 = arith.constant 0 : index
    %c0_6 = arith.constant 0 : index
    %6 = vector.load %arg4[%c0_5, %c0_6] : memref<8x1xf32, #tpu.memory_space<vmem>>, vector<8x1xf32>
    tpu.vector_store %arg4[%c0_5, %c0_6], %5 {strides = array<i32>} : memref<8x1xf32, #tpu.memory_space<vmem>>, vector<8x1xf32>,
    return
  }
  func.func @transform_0(%arg0: i32) -> (i32, i32) {
    %c0_i32 = arith.constant 0 : i32
    %c0_i32_0 = arith.constant 0 : i32
    return %arg0, %c0_i32 : i32, i32
  }
  func.func @transform_1(%arg0: i32) -> (i32, i32) {
    %c0_i32 = arith.constant 0 : i32
    %c0_i32_0 = arith.constant 0 : i32
    %c0_i32_1 = arith.constant 0 : i32
    return %c0_i32, %c0_i32_0 : i32, i32
  }
  func.func @transform_2(%arg0: i32) -> (i32, i32) {
    %c0_i32 = arith.constant 0 : i32
    %c0_i32_0 = arith.constant 0 : i32
    %c0_i32_1 = arith.constant 0 : i32
    return %c0_i32, %c0_i32_0 : i32, i32
  }
  func.func @transform_3(%arg0: i32) -> (i32, i32) {
    %c0_i32 = arith.constant 0 : i32
    %c0_i32_0 = arith.constant 0 : i32
    return %arg0, %c0_i32 : i32, i32
  }
}

</mosaic_0001>

<bundles_post_ra>
// kernel: linear_mafl_apply.1
= control target key start
LH: loop header
LB: loop body
LE: loop exit
PB: predicated region body
PF: predicated region fallthrough
CT: control target
= control target key end

     0   :  { %vm25_vm0 = vcmask 261120   ;;  %vm49_vm1 = vcmask 7168   ;;  %s98_s1 = inlined_call_operand.vmem [shape: f32[32,1], index: 1, kind: input, shape index: {}]   ;;  %s99_s2 = inlined_call_operand.<no memory space> [shape: f32[1,1], index: 2, kind: input, shape index: {}]   ;;  %s100_s0 = inlined_call_operand.vmem [shape: f32[8,32], index: 0, kind: input, shape index: {}]   ;;  %s101_s3 = inlined_call_operand.vmem [shape: f32[8,1], index: 3, kind: output, shape index: {}]  }
   0x1   :  { %v20_v0 = vld [vmem:[%s98_s1 + $0x18] sm:$0xff]  ;;  %v19_v1 = vld [vmem:[%s98_s1 + $0x10] sm:$0xff]  ;;  %v8_v2 = vstv %s99_s2  ;;  %v18_v3 = vld [vmem:[%s98_s1 + $0x8] sm:$0xff] }
   0x2   :  { %41 = vmatpush.msra.mxu0 %v20_v0  ;;  %9 = vst [vmem:[#allocation2] sm:$0x1] %v8_v2  ;;  %v17_v4 = vld [vmem:[%s98_s1] sm:$0xff] }
   0x3   :  { %v16_v5 = vld [vmem:[%s100_s0] sm:$0xff] }
   0x4   :  { %42 = vmatpush.msra.mxu0 %v19_v1 }
   0x6   :  { %43 = vmatpush.msra.mxu0 %v18_v3 }
   0x8   :  { %44 = vmatpush.msra.mxu0 %v17_v4 }
   0x9   :  { %55 = vmatmul.msk.f32.vlgmr.msra.gmra.mxu0 %vm25_vm0, %v16_v5  ;;  %v56_v6 = vld [vmem:[#allocation2] ss:$0 sm:$0xff] }
  0x86   :  { %v46_v7 = vpop.f32.mrf.mxu0 }
  0x87   :  { %v47_v8 = vadd.f32 %v56_v6, %v46_v7 }
  0x89   :  { %50 = vst.msk [vmem:[%s101_s3] sm:$0xff] %vm49_vm1, %v47_v8 }

</bundles_post_ra>
